<compile_context>
chip_gen: v7x
topology: tpu7x:2x2x1
jax: 0.10.0
libtpu: 0.0.40
codegen_flags: <defaults>
</compile_context>

<pallas_src>
import collections

import jax
import jax.numpy as jnp
from jax.experimental import pallas as pl
from jax.experimental.pallas import tpu as pltpu


def _round_up(n, m):
    return ((n + m - 1) // m) * m


def _make_decoder_kernel(num_linear_layers, zdim, x_dim):
    """Kernel for `num_linear_layers` Linear layers (ReLU between all but last).

    Ref layout:
        refs = (z, w0, b0, w1, b1, ..., w_{L-1}, b_{L-1}, out)
        z   : (TB, zdim)            f32
        w0  : (zdim, Hp)            f32   (consumed on the VPU; K is tiny)
        w_i : (Hp, Hp) / (Hp, Xp)   f32 or bf16 (MXU operands)
        b_i : (1, out_i)            f32
        out : (TB, x_dim)           f32   (un-padded; narrow masked store)
    """

    def kernel(*refs):
        z_ref, out_ref = refs[0], refs[-1]
        param_refs = refs[1:-1]
        w_refs = param_refs[0::2]
        b_refs = param_refs[1::2]

        z = z_ref[...]                                  # (TB, zdim) f32

        # ---- input layer on the VPU: K = zdim is far too small for the MXU.
        h = z[:, 0:1] * w_refs[0][0:1, :] + b_refs[0][...]
        for k in range(1, zdim):
            h = h + z[:, k:k + 1] * w_refs[0][k:k + 1, :]
        h = jnp.maximum(h, 0.0)

        # ---- remaining layers on the MXU, f32 accumulate, f32 bias/ReLU path.
        for i in range(1, num_linear_layers):
            w = w_refs[i]
            h = jnp.dot(h.astype(w.dtype), w[...],
                        preferred_element_type=jnp.float32) + b_refs[i][...]
            if i < num_linear_layers - 1:
                h = jnp.maximum(h, 0.0)                 # no act after last layer

        # un-padded store: only the real x_dim lanes go to HBM
        out_ref[...] = h[:, :x_dim].astype(out_ref.dtype)

    return kernel


DecoderParams = collections.namedtuple(
    "DecoderParams", ["args", "n_lin", "zdim", "x_dim", "Hp", "Xp"])


def prepare_decoder_params(params, compute_dtype=jnp.float32):
    """Pad/cast the weights ONCE (hoisted out of the per-call hot path).

    params: dict with w0..w{L-1} stored as (in, out) and b0..b{L-1} as (out,).
    compute_dtype: dtype of the MXU weight operands for the H-wide layers.
      bfloat16 is safe + beneficial on v5e, v6e and v7x (f32 accumulation,
      f32 bias/ReLU path).
    """
    n_lin = 0
    while f"w{n_lin}" in params:
        n_lin += 1
    zdim = params["w0"].shape[0]
    x_dim = params[f"w{n_lin - 1}"].shape[1]
    num_hidden = params["w0"].shape[1]

    Hp = _round_up(num_hidden, 128)                     # lane-dense hidden width
    Xp = _round_up(x_dim, 128)                          # lane-dense last matmul

    args = []
    for i in range(n_lin):
        w = jnp.asarray(params[f"w{i}"], jnp.float32)
        b = jnp.asarray(params[f"b{i}"], jnp.float32).reshape(1, -1)
        rows = w.shape[0] if i == 0 else Hp
        cols = Hp if i < n_lin - 1 else Xp
        wp = jnp.pad(w, ((0, rows - w.shape[0]), (0, cols - w.shape[1])))
        bp = jnp.pad(b, ((0, 0), (0, cols - b.shape[1])))
        if i > 0:                                       # MXU operands only
            wp = wp.astype(compute_dtype)
        args += [wp, bp]

    return DecoderParams(tuple(args), n_lin, zdim, x_dim, Hp, Xp)


def decoder_simple_forward(z, prepared, *, batch_tile=1024):
    """Forward pass.  `prepared` comes from prepare_decoder_params (call once).

    Always uses the batch-tiled grid: grid = cdiv(B, TB) with a 'parallel'
    axis (megacore / v7x 2-TC sharding).  Ragged batches are zero-padded to a
    tile multiple (cheap: B*zdim*4 bytes) and the extra rows dropped after.
    """
    B = z.shape[0]
    z2d = z.reshape(B, -1).astype(jnp.float32)          # mirrors z.view(B, -1)
    assert z2d.shape[1] == prepared.zdim

    n_lin, zdim, x_dim = prepared.n_lin, prepared.zdim, prepared.x_dim
    Hp, Xp = prepared.Hp, prepared.Xp

    TB = _round_up(min(batch_tile, _round_up(B, 8)), 8)
    Bp = _round_up(B, TB)
    if Bp != B:
        z2d = jnp.pad(z2d, ((0, Bp - B), (0, 0)))
    grid = (Bp // TB,)

    in_specs = [pl.BlockSpec((TB, zdim), lambda i: (i, 0))]
    for a in prepared.args:
        # full-array block, constant block index -> stays VMEM-resident
        in_specs.append(pl.BlockSpec(a.shape, lambda i: (0, 0)))
    out_specs = pl.BlockSpec((TB, x_dim), lambda i: (i, 0))

    # advisory cost hint (narrow output accounted for)
    flops = 2 * Bp * (zdim * Hp + max(n_lin - 2, 0) * Hp * Hp + Hp * Xp)
    bytes_accessed = (int(z2d.size) * 4
                      + sum(int(a.size) * a.dtype.itemsize
                            for a in prepared.args)
                      + Bp * x_dim * 4)
    cost = pl.CostEstimate(flops=flops, transcendentals=0,
                           bytes_accessed=bytes_accessed)

    kernel = _make_decoder_kernel(n_lin, zdim, x_dim)

    out = pl.pallas_call(
        kernel,
        out_shape=jax.ShapeDtypeStruct((Bp, x_dim), jnp.float32),
        grid=grid,
        in_specs=in_specs,
        out_specs=out_specs,
        compiler_params=pltpu.CompilerParams(
            dimension_semantics=("parallel",)),
        cost_estimate=cost,
    )(z2d, *prepared.args)

    return out[:B] if Bp != B else out


def make_params(key, x_dim=2, zdim=2, n_layers=2, num_hidden=64):
    """Synthetic parameters with nn.Linear init, stored transposed as (in, out).
    loggamma exists in the module but is unused by forward(); kept for parity."""
    dims_in = [zdim] + [num_hidden] * n_layers + [num_hidden]
    dims_out = [num_hidden] * (n_layers + 1) + [x_dim]
    params = {}
    keys = jax.random.split(key, len(dims_in) * 2)
    for i, (din, dout) in enumerate(zip(dims_in, dims_out)):
        bound = 1.0 / jnp.sqrt(jnp.float32(din))        # PyTorch default bound
        params[f"w{i}"] = jax.random.uniform(
            keys[2 * i], (din, dout), jnp.float32, -bound, bound)
        params[f"b{i}"] = jax.random.uniform(
            keys[2 * i + 1], (dout,), jnp.float32, -bound, bound)
    params["loggamma"] = jnp.float32(0.0)               # not used in forward
    return params


def reference_forward(z, params):
    B = z.shape[0]
    h = z.reshape(B, -1)
    n_lin = 0
    while f"w{n_lin}" in params:
        n_lin += 1
    for i in range(n_lin):
        h = h @ params[f"w{i}"] + params[f"b{i}"]
        if i < n_lin - 1:
            h = jnp.maximum(h, 0.0)
    return h


if __name__ == "__main__":
    key = jax.random.PRNGKey(0)
    pkey, zkey1, zkey2, zkey3 = jax.random.split(key, 4)

    x_dim, zdim, n_layers, num_hidden = 2, 2, 2, 64
    params = make_params(pkey, x_dim=x_dim, zdim=zdim,
                         n_layers=n_layers, num_hidden=num_hidden)

    # Prepare (pad/cast) parameters ONCE, outside the per-call hot path.
    prep_f32 = prepare_decoder_params(params, compute_dtype=jnp.float32)
    prep_bf16 = prepare_decoder_params(params, compute_dtype=jnp.bfloat16)

    # --- small batch: single-tile grid, f32 everywhere
    z_small = jax.random.normal(zkey1, (8, zdim), jnp.float32)
    out_small = jax.block_until_ready(decoder_simple_forward(z_small, prep_f32))
    ref_small = reference_forward(z_small, params)
    assert out_small.shape == (8, x_dim)
    assert jnp.allclose(out_small, ref_small, atol=1e-4, rtol=1e-4), \
        "f32 small-batch mismatch vs reference"

    # --- ragged batch: wrapper pads B to a tile multiple, slices rows back
    z_rag = jax.random.normal(zkey2, (100, zdim), jnp.float32)
    out_rag = jax.block_until_ready(decoder_simple_forward(z_rag, prep_f32))
    ref_rag = reference_forward(z_rag, params)
    assert out_rag.shape == (100, x_dim)
    assert jnp.allclose(out_rag, ref_rag, atol=1e-4, rtol=1e-4), \
        "f32 ragged-batch mismatch vs reference"

    # --- larger batch, multi-step grid (grid=4), 'parallel' axis
    z_big = jax.random.normal(zkey3, (1024, zdim), jnp.float32)
    out_big = jax.block_until_ready(
        decoder_simple_forward(z_big, prep_f32, batch_tile=256))
    ref_big = reference_forward(z_big, params)
    assert out_big.shape == (1024, x_dim)
    assert jnp.allclose(out_big, ref_big, atol=1e-4, rtol=1e-4), \
        "f32 batch-tiled mismatch vs reference"

    # --- bf16 MXU operands (safe on v5e/v6e/v7x), f32 accumulation + VPU path
    out_bf16 = jax.block_until_ready(
        decoder_simple_forward(z_small, prep_bf16))
    assert jnp.allclose(out_bf16, ref_small, atol=5e-2, rtol=5e-2), \
        "bf16 mismatch vs f32 reference"

    print("KERNEL_OK")
</pallas_src>

<mosaic_0001>
module attributes {stable_mosaic.version = 11 : i64} {
  func.func @kernel(%arg0: i32, %arg1: memref<8x2xf32, #tpu.memory_space<vmem>>, %arg2: memref<2x128xf32, #tpu.memory_space<vmem>>, %arg3: memref<1x128xf32, #tpu.memory_space<vmem>>, %arg4: memref<128x128xf32, #tpu.memory_space<vmem>>, %arg5: memref<1x128xf32, #tpu.memory_space<vmem>>, %arg6: memref<128x128xf32, #tpu.memory_space<vmem>>, %arg7: memref<1x128xf32, #tpu.memory_space<vmem>>, %arg8: memref<128x128xf32, #tpu.memory_space<vmem>>, %arg9: memref<1x128xf32, #tpu.memory_space<vmem>>, %arg10: memref<8x2xf32, #tpu.memory_space<vmem>>) attributes {dimension_semantics = [#tpu.dimension_semantics<parallel>], iteration_bounds = array<i64: 1>, scalar_prefetch = 0 : i64, scratch_operands = 0 : i64, tpu.core_type = #tpu.core_type<tc>, window_params = [{transform_indices = @transform_0, window_bounds = array<i64: 8, 2>}, {pipeline_mode = #tpu.pipeline_mode<synchronous>, transform_indices = @transform_1, window_bounds = array<i64: 2, 128>}, {pipeline_mode = #tpu.pipeline_mode<synchronous>, transform_indices = @transform_2, window_bounds = array<i64: 1, 128>}, {pipeline_mode = #tpu.pipeline_mode<synchronous>, transform_indices = @transform_3, window_bounds = array<i64: 128, 128>}, {pipeline_mode = #tpu.pipeline_mode<synchronous>, transform_indices = @transform_4, window_bounds = array<i64: 1, 128>}, {pipeline_mode = #tpu.pipeline_mode<synchronous>, transform_indices = @transform_5, window_bounds = array<i64: 128, 128>}, {pipeline_mode = #tpu.pipeline_mode<synchronous>, transform_indices = @transform_6, window_bounds = array<i64: 1, 128>}, {pipeline_mode = #tpu.pipeline_mode<synchronous>, transform_indices = @transform_7, window_bounds = array<i64: 128, 128>}, {pipeline_mode = #tpu.pipeline_mode<synchronous>, transform_indices = @transform_8, window_bounds = array<i64: 1, 128>}, {transform_indices = @transform_9, window_bounds = array<i64: 8, 2>}]} {
    %c0 = arith.constant 0 : index
    %c0_0 = arith.constant 0 : index
    %0 = vector.load %arg1[%c0, %c0_0] : memref<8x2xf32, #tpu.memory_space<vmem>>, vector<8x2xf32>
    %1 = vector.extract_strided_slice %0 {offsets = [0, 0], sizes = [8, 1], strides = [1, 1]} : vector<8x2xf32> to vector<8x1xf32>
    %c0_1 = arith.constant 0 : index
    %c0_2 = arith.constant 0 : index
    %2 = vector.load %arg2[%c0_1, %c0_2] : memref<2x128xf32, #tpu.memory_space<vmem>>, vector<1x128xf32>
    %3 = vector.broadcast %1 : vector<8x1xf32> to vector<8x128xf32>
    %4 = vector.broadcast %2 : vector<1x128xf32> to vector<8x128xf32>
    %5 = arith.mulf %3, %4 : vector<8x128xf32>
    %c0_3 = arith.constant 0 : index
    %c0_4 = arith.constant 0 : index
    %6 = vector.load %arg3[%c0_3, %c0_4] : memref<1x128xf32, #tpu.memory_space<vmem>>, vector<1x128xf32>
    %7 = vector.broadcast %6 : vector<1x128xf32> to vector<8x128xf32>
    %8 = arith.addf %5, %7 : vector<8x128xf32>
    %9 = vector.extract_strided_slice %0 {offsets = [0, 1], sizes = [8, 1], strides = [1, 1]} : vector<8x2xf32> to vector<8x1xf32>
    %c1 = arith.constant 1 : index
    %c0_5 = arith.constant 0 : index
    %10 = vector.load %arg2[%c1, %c0_5] : memref<2x128xf32, #tpu.memory_space<vmem>>, vector<1x128xf32>
    %11 = vector.broadcast %9 : vector<8x1xf32> to vector<8x128xf32>
    %12 = vector.broadcast %10 : vector<1x128xf32> to vector<8x128xf32>
    %13 = arith.mulf %11, %12 : vector<8x128xf32>
    %14 = arith.addf %8, %13 : vector<8x128xf32>
    %cst = arith.constant 0.000000e+00 : f32
    %15 = vector.broadcast %cst : f32 to vector<8x128xf32>
    %16 = arith.maximumf %14, %15 : vector<8x128xf32>
    %c0_6 = arith.constant 0 : index
    %c0_7 = arith.constant 0 : index
    %17 = vector.load %arg4[%c0_6, %c0_7] : memref<128x128xf32, #tpu.memory_space<vmem>>, vector<128x128xf32>
    %cst_8 = arith.constant dense<0.000000e+00> : vector<8x128xf32>
    %18 = tpu.matmul %16, %17, %cst_8 {dimension_numbers = #tpu.dot_dimension_numbers<[1], [0], [0], [1], [0, 0, 1, 1], [], []>} : vector<8x128xf32>, vector<128x128xf32>, vector<8x128xf32> -> vector<8x128xf32>
    %c0_9 = arith.constant 0 : index
    %c0_10 = arith.constant 0 : index
    %19 = vector.load %arg5[%c0_9, %c0_10] : memref<1x128xf32, #tpu.memory_space<vmem>>, vector<1x128xf32>
    %20 = vector.broadcast %19 : vector<1x128xf32> to vector<8x128xf32>
    %21 = arith.addf %18, %20 : vector<8x128xf32>
    %cst_11 = arith.constant 0.000000e+00 : f32
    %22 = vector.broadcast %cst_11 : f32 to vector<8x128xf32>
    %23 = arith.maximumf %21, %22 : vector<8x128xf32>
    %c0_12 = arith.constant 0 : index
    %c0_13 = arith.constant 0 : index
    %24 = vector.load %arg6[%c0_12, %c0_13] : memref<128x128xf32, #tpu.memory_space<vmem>>, vector<128x128xf32>
    %cst_14 = arith.constant dense<0.000000e+00> : vector<8x128xf32>
    %25 = tpu.matmul %23, %24, %cst_14 {dimension_numbers = #tpu.dot_dimension_numbers<[1], [0], [0], [1], [0, 0, 1, 1], [], []>} : vector<8x128xf32>, vector<128x128xf32>, vector<8x128xf32> -> vector<8x128xf32>
    %c0_15 = arith.constant 0 : index
    %c0_16 = arith.constant 0 : index
    %26 = vector.load %arg7[%c0_15, %c0_16] : memref<1x128xf32, #tpu.memory_space<vmem>>, vector<1x128xf32>
    %27 = vector.broadcast %26 : vector<1x128xf32> to vector<8x128xf32>
    %28 = arith.addf %25, %27 : vector<8x128xf32>
    %cst_17 = arith.constant 0.000000e+00 : f32
    %29 = vector.broadcast %cst_17 : f32 to vector<8x128xf32>
    %30 = arith.maximumf %28, %29 : vector<8x128xf32>
    %c0_18 = arith.constant 0 : index
    %c0_19 = arith.constant 0 : index
    %31 = vector.load %arg8[%c0_18, %c0_19] : memref<128x128xf32, #tpu.memory_space<vmem>>, vector<128x128xf32>
    %cst_20 = arith.constant dense<0.000000e+00> : vector<8x128xf32>
    %32 = tpu.matmul %30, %31, %cst_20 {dimension_numbers = #tpu.dot_dimension_numbers<[1], [0], [0], [1], [0, 0, 1, 1], [], []>} : vector<8x128xf32>, vector<128x128xf32>, vector<8x128xf32> -> vector<8x128xf32>
    %c0_21 = arith.constant 0 : index
    %c0_22 = arith.constant 0 : index
    %33 = vector.load %arg9[%c0_21, %c0_22] : memref<1x128xf32, #tpu.memory_space<vmem>>, vector<1x128xf32>
    %34 = vector.broadcast %33 : vector<1x128xf32> to vector<8x128xf32>
    %35 = arith.addf %32, %34 : vector<8x128xf32>
    %36 = vector.extract_strided_slice %35 {offsets = [0, 0], sizes = [8, 2], strides = [1, 1]} : vector<8x128xf32> to vector<8x2xf32>
    %c0_23 = arith.constant 0 : index
    %c0_24 = arith.constant 0 : index
    %37 = vector.load %arg10[%c0_23, %c0_24] : memref<8x2xf32, #tpu.memory_space<vmem>>, vector<8x2xf32>
    tpu.vector_store %arg10[%c0_23, %c0_24], %36 {strides = array<i32>} : memref<8x2xf32, #tpu.memory_space<vmem>>, vector<8x2xf32>,
    return
  }
  func.func @transform_0(%arg0: i32) -> (i32, i32) {
    %c0_i32 = arith.constant 0 : i32
    %c0_i32_0 = arith.constant 0 : i32
    return %arg0, %c0_i32 : i32, i32
  }
  func.func @transform_1(%arg0: i32) -> (i32, i32) {
    %c0_i32 = arith.constant 0 : i32
    %c0_i32_0 = arith.constant 0 : i32
    %c0_i32_1 = arith.constant 0 : i32
    return %c0_i32, %c0_i32_0 : i32, i32
  }
  func.func @transform_2(%arg0: i32) -> (i32, i32) {
    %c0_i32 = arith.constant 0 : i32
    %c0_i32_0 = arith.constant 0 : i32
    %c0_i32_1 = arith.constant 0 : i32
    return %c0_i32, %c0_i32_0 : i32, i32
  }
  func.func @transform_3(%arg0: i32) -> (i32, i32) {
    %c0_i32 = arith.constant 0 : i32
    %c0_i32_0 = arith.constant 0 : i32
    %c0_i32_1 = arith.constant 0 : i32
    return %c0_i32, %c0_i32_0 : i32, i32
  }
  func.func @transform_4(%arg0: i32) -> (i32, i32) {
    %c0_i32 = arith.constant 0 : i32
    %c0_i32_0 = arith.constant 0 : i32
    %c0_i32_1 = arith.constant 0 : i32
    return %c0_i32, %c0_i32_0 : i32, i32
  }
  func.func @transform_5(%arg0: i32) -> (i32, i32) {
    %c0_i32 = arith.constant 0 : i32
    %c0_i32_0 = arith.constant 0 : i32
    %c0_i32_1 = arith.constant 0 : i32
    return %c0_i32, %c0_i32_0 : i32, i32
  }
  func.func @transform_6(%arg0: i32) -> (i32, i32) {
    %c0_i32 = arith.constant 0 : i32
    %c0_i32_0 = arith.constant 0 : i32
    %c0_i32_1 = arith.constant 0 : i32
    return %c0_i32, %c0_i32_0 : i32, i32
  }
  func.func @transform_7(%arg0: i32) -> (i32, i32) {
    %c0_i32 = arith.constant 0 : i32
    %c0_i32_0 = arith.constant 0 : i32
    %c0_i32_1 = arith.constant 0 : i32
    return %c0_i32, %c0_i32_0 : i32, i32
  }
  func.func @transform_8(%arg0: i32) -> (i32, i32) {
    %c0_i32 = arith.constant 0 : i32
    %c0_i32_0 = arith.constant 0 : i32
    %c0_i32_1 = arith.constant 0 : i32
    return %c0_i32, %c0_i32_0 : i32, i32
  }
  func.func @transform_9(%arg0: i32) -> (i32, i32) {
    %c0_i32 = arith.constant 0 : i32
    %c0_i32_0 = arith.constant 0 : i32
    return %arg0, %c0_i32 : i32, i32
  }
}

</mosaic_0001>

<bundles_post_ra>
// kernel: tpu_custom_call.1
= control target key start
LH: loop header
LB: loop body
LE: loop exit
PB: predicated region body
PF: predicated region fallthrough
CT: control target
= control target key end

     0   :  { %14 = vsyncpa [#allocation3], 0  ;;  %s876_s0 = inlined_call_operand.vmem [shape: f32[8,2], index: 0, kind: input, shape index: {}]   ;;  %s877_s1 = inlined_call_operand.vmem [shape: f32[2,128], index: 1, kind: input, shape index: {}]   ;;  %s878_s2 = inlined_call_operand.vmem [shape: f32[1,128], index: 2, kind: input, shape index: {}]   ;;  %s879_s3 = inlined_call_operand.hbm [shape: f32[128,128], index: 3, kind: input, shape index: {}]   ;;  %s880_s4 = inlined_call_operand.vmem [shape: f32[1,128], index: 4, kind: input, shape index: {}]   ;;  %s881_s5 = inlined_call_operand.hbm [shape: f32[128,128], index: 5, kind: input, shape index: {}]   ;;  %s882_s6 = inlined_call_operand.vmem [shape: f32[1,128], index: 6, kind: input, shape index: {}]   ;;  %s883_s7 = inlined_call_operand.hbm [shape: f32[128,128], index: 7, kind: input, shape index: {}]   ;;  %s884_s8 = inlined_call_operand.vmem [shape: f32[1,128], index: 8, kind: input, shape index: {}]   ;;  %s885_s9 = inlined_call_operand.vmem [shape: f32[8,2], index: 9, kind: output, shape index: {}]  }
   0x1   :  { %15 = vsyncpa [#allocation5], 0  ;;  %s710_s30 = smov [#allocation4]   ;;  %s711_s11 = smov [#allocation2]  }
   0x2   :  { %s41_s10 = sshll.u32 %s710_s30, 4  ;;  %s27_s12 = sshll.u32 %s711_s11, 4  ;;  %s42_s10 = int_to_ptr.vmem [resolvable:$true] %s41_s10  ;;  %s770_s12 = int_to_ptr.vmem [resolvable:$true] %s27_s12 }
   0x3   :  { %s640_s15 = scalar_lea.hbm %s881_s5, 2048 }
   0x4   :  { %p641_p0 = scmp.ne.s32.totalorder %s881_s5, %s640_s15  ;;  %p644_p1 = scmp.lt.u32.totalorder %s640_s15, %s881_s5 }
   0x6   :  { %p646_p2 = pnand %p644_p1, %p641_p0 }
   0x8   :  { %649 = shalt.err (!%p646_p2)
}
   0x9   :  { %s650_s20 = scalar_lea.vmem %s42_s10, 2048  ;;  %p655_p4 = scmp.lt.s32.totalorder %s42_s10, %s42_s10 }
   0xa   :  { %p651_p3 = scmp.ne.s32.totalorder %s42_s10, %s650_s20  ;;  %p656_p5 = scmp.lt.s32.totalorder %s650_s20, %s650_s20 }
   0xc   :  { %p657_p6 = por %p656_p5, %p655_p4 }
   0xe   :  { %p658_p7 = pnand %p657_p6, %p651_p3 }
  0x10   :  { %661 = shalt.err (!%p658_p7)
}
  0x11   :  { %s712_s21 = smov 128   ;;  %s713_s22 = smov 8  }
  0x12   :  { %47 = dma.hbm_to_vmem [thread:$0]  %s881_s5, 2048, %s42_s10, [#allocation5], %s712_s21, %s712_s21, %s713_s22  }
  0x13   :  { %s662_s27 = scalar_lea.hbm %s879_s3, 2048 }
  0x14   :  { %p663_p8 = scmp.ne.s32.totalorder %s879_s3, %s662_s27  ;;  %p666_p9 = scmp.lt.u32.totalorder %s662_s27, %s879_s3 }
  0x16   :  { %p668_p10 = pnand %p666_p9, %p663_p8 }
  0x18   :  { %671 = shalt.err (!%p668_p10)
}
  0x19   :  { %s672_s13 = scalar_lea.vmem %s770_s12, 2048  ;;  %p677_p12 = scmp.lt.s32.totalorder %s770_s12, %s770_s12 }
  0x1a   :  { %p673_p11 = scmp.ne.s32.totalorder %s770_s12, %s672_s13  ;;  %p678_p13 = scmp.lt.s32.totalorder %s672_s13, %s672_s13 }
  0x1c   :  { %p679_p0 = por %p678_p13, %p677_p12 }
  0x1e   :  { %p680_p1 = pnand %p679_p0, %p673_p11 }
  0x20   :  { %683 = shalt.err (!%p680_p1)
}
  0x21   :  { %33 = dma.hbm_to_vmem [thread:$0]  %s879_s3, 2048, %s770_s12, [#allocation3], %s712_s21, %s712_s21, %s713_s22  }
  0x22   :  { %s714_s14 = smov [#allocation6]   ;;  %s684_s18 = scalar_lea.hbm %s883_s7, 2048 }
  0x23   :  { %s55_s15 = sshll.u32 %s714_s14, 4  ;;  %p685_p2 = scmp.ne.s32.totalorder %s883_s7, %s684_s18  ;;  %s56_s15 = int_to_ptr.vmem [resolvable:$true] %s55_s15 }
  0x24   :  { %p688_p3 = scmp.lt.u32.totalorder %s684_s18, %s883_s7 }
  0x26   :  { %p690_p4 = pnand %p688_p3, %p685_p2 }
  0x28   :  { %693 = shalt.err (!%p690_p4)
}
  0x29   :  { %s694_s25 = scalar_lea.vmem %s56_s15, 2048  ;;  %p699_p6 = scmp.lt.s32.totalorder %s56_s15, %s56_s15 }
  0x2a   :  { %p695_p5 = scmp.ne.s32.totalorder %s56_s15, %s694_s25  ;;  %p700_p7 = scmp.lt.s32.totalorder %s694_s25, %s694_s25 }
  0x2c   :  { %p701_p8 = por %p700_p7, %p699_p6 }
  0x2e   :  { %p702_p9 = pnand %p701_p8, %p695_p5 }
  0x30   :  { %705 = shalt.err (!%p702_p9)
}
  0x31   :  { %61 = dma.hbm_to_vmem [thread:$0]  %s883_s7, 2048, %s56_s15, [#allocation5], %s712_s21, %s712_s21, %s713_s22  }
  0x32   :  { %706 = dma.done.wait [#allocation3], 2048  }
  0x33   :  { %707 = vsyncadd [#allocation3], 4294965248 }
  0x34   :  { %708 = dma.done.wait [#allocation5], 4096  }
  0x35   :  { %709 = vsyncadd [#allocation5], 4294963200  ;;  %v715_v0 = vmov 0   ;;  %v716_v1 = vmov 0.0|0.0   ;;  %v73_v2 = vld [vmem:[%s876_s0] sm:$0xff]  ;;  %v106_v4 = vld [vmem:[#allocation2 + $0x8] sm:$0xff] }
  0x36   :  { %638 = vset.pattern.permute.xlu0 %v715_v0  ;;  %556 = vmatprep.subr.bf16.mxu0 %v716_v1  ;;  %v105_v3 = vld [vmem:[#allocation2] sm:$0xff]  ;;  %v107_v6 = vld [vmem:[#allocation2 + $0x10] sm:$0xff]  ;;  %v108_v7 = vld [vmem:[#allocation2 + $0x18] sm:$0xff]  ;;  %v717_v11 = vmov 1   ;;  %vm718_vm0 = vmmov 0   ;;  %v719_v18 = vmov 0.0  }
  0x37   :  { %580 = vmatprep.subr.bf16.mxu1 %v716_v1  ;;  %77 = vperm.xlu0 %638, %v73_v2   ;;  %v557_v5 = vpack.c.bf16 %v106_v4, %v105_v3  ;;  %v560_v8 = vpack.c.bf16 %v108_v7, %v107_v6  ;;  %v109_v9 = vld [vmem:[#allocation2 + $0x20] sm:$0xff]  ;;  %v110_v10 = vld [vmem:[#allocation2 + $0x28] sm:$0xff]  ;;  %v111_v13 = vld [vmem:[#allocation2 + $0x30] sm:$0xff]  ;;  %vm386_vm1 = vcmask 15360  }
  0x38   :  { %v563_v12 = vpack.c.bf16 %v110_v10, %v109_v9  ;;  %v112_v14 = vld [vmem:[#allocation2 + $0x38] sm:$0xff]  ;;  %v113_v16 = vld [vmem:[#allocation2 + $0x40] sm:$0xff]  ;;  %v114_v17 = vld [vmem:[#allocation2 + $0x48] sm:$0xff]  ;;  %483 = vmatprep.mubr.msk.f32.mxu0 %vm718_vm0, %v719_v18  ;;  %518 = vmatprep.mubr.msk.f32.mxu1 %vm718_vm0, %v719_v18 }
  0x39   :  { %558 = vmatpush3.bf16.msra.mxu0 %v557_v5  ;;  %v566_v15 = vpack.c.bf16 %v112_v14, %v111_v13  ;;  %v199_v19 = vld [vmem:[#allocation4] sm:$0xff]  ;;  %v200_v20 = vld [vmem:[#allocation4 + $0x8] sm:$0xff]  ;;  %v201_v21 = vld [vmem:[#allocation4 + $0x10] sm:$0xff]  ;;  %v569_v24 = vpack.c.bf16 %v114_v17, %v113_v16 }
  0x3a   :  { %559 = vmatprep.subr.bf16.mxu0 %v716_v1  ;;  %v581_v22 = vpack.c.bf16 %v200_v20, %v199_v19  ;;  %v202_v23 = vld [vmem:[#allocation4 + $0x18] sm:$0xff]  ;;  %v115_v25 = vld [vmem:[#allocation2 + $0x50] sm:$0xff]  ;;  %v203_v28 = vld [vmem:[#allocation4 + $0x20] sm:$0xff] }
  0x3b   :  { %639 = vset.pattern.permute.xlu0 %v717_v11  ;;  %v584_v26 = vpack.c.bf16 %v202_v23, %v201_v21  ;;  %v116_v27 = vld [vmem:[#allocation2 + $0x58] sm:$0xff]  ;;  %v204_v29 = vld [vmem:[#allocation4 + $0x28] sm:$0xff]  ;;  %v117_v31 = vld [vmem:[#allocation2 + $0x60] sm:$0xff] }
  0x3c   :  { %95 = vperm.xlu0 %639, %v73_v2   ;;  %582 = vmatpush3.bf16.msra.mxu1 %v581_v22  ;;  %v572_v30 = vpack.c.bf16 %v116_v27, %v115_v25  ;;  %v587_v32 = vpack.c.bf16 %v204_v29, %v203_v28  ;;  %v118_v33 = vld [vmem:[#allocation2 + $0x68] sm:$0xff]  ;;  %v205_v34 = vld [vmem:[#allocation4 + $0x30] sm:$0xff]  ;;  %v206_v35 = vld [vmem:[#allocation4 + $0x38] sm:$0xff] }
  0x3d   :  { %561 = vmatpush3.bf16.msra.mxu0 %v560_v8  ;;  %583 = vmatprep.subr.bf16.mxu1 %v716_v1  ;;  %v575_v36 = vpack.c.bf16 %v118_v33, %v117_v31  ;;  %v119_v37 = vld [vmem:[#allocation2 + $0x70] sm:$0xff]  ;;  %v590_v38 = vpack.c.bf16 %v206_v35, %v205_v34  ;;  %v120_v39 = vld [vmem:[#allocation2 + $0x78] sm:$0xff]  ;;  %v207_v40 = vld [vmem:[#allocation4 + $0x40] sm:$0xff] }
  0x3e   :  { %562 = vmatprep.subr.bf16.mxu0 %v716_v1  ;;  %v208_v41 = vld [vmem:[#allocation4 + $0x48] sm:$0xff]  ;;  %v578_v42 = vpack.c.bf16 %v120_v39, %v119_v37  ;;  %v209_v44 = vld [vmem:[#allocation4 + $0x50] sm:$0xff]  ;;  %v210_v45 = vld [vmem:[#allocation4 + $0x58] sm:$0xff] }
  0x3f   :  { %v593_v43 = vpack.c.bf16 %v208_v41, %v207_v40  ;;  %v596_v46 = vpack.c.bf16 %v210_v45, %v209_v44  ;;  %v211_v47 = vld [vmem:[#allocation4 + $0x60] sm:$0xff]  ;;  %v212_v48 = vld [vmem:[#allocation4 + $0x68] sm:$0xff]  ;;  %v213_v60 = vld [vmem:[#allocation4 + $0x70] sm:$0xff] }
  0x40   :  { %585 = vmatpush3.bf16.msra.mxu1 %v584_v26  ;;  %v599_v49 = vpack.c.bf16 %v212_v48, %v211_v47  ;;  %v394_v50 = vld [vmem:[%s877_s1] ss:$0 sm:$0xff]  ;;  %v396_v54 = vld [vmem:[%s877_s1 + $0x1] ss:$0 sm:$0xff]  ;;  %v214_v61 = vld [vmem:[#allocation4 + $0x78] sm:$0xff] }
  0x41   :  { %564 = vmatpush3.bf16.msra.mxu0 %v563_v12  ;;  %586 = vmatprep.subr.bf16.mxu1 %v716_v1  ;;  %v395_v53 = vld [vmem:[%s878_s2] ss:$0 sm:$0xff]  ;;  %v602_v62 = vpack.c.bf16 %v214_v61, %v213_v60  ;;  %v294_v0 = vld [vmem:[#allocation6 + $0x8] sm:$0xff]  ;;  %v295_v2 = vld [vmem:[#allocation6 + $0x10] sm:$0xff] }
  0x42   :  { %565 = vmatprep.subr.bf16.mxu0 %v716_v1  ;;  %v293_v63 = vld [vmem:[#allocation6] sm:$0xff]  ;;  %v296_v4 = vld [vmem:[#allocation6 + $0x18] sm:$0xff]  ;;  %v298_v7 = vld [vmem:[#allocation6 + $0x28] sm:$0xff] }
  0x43   :  { %v605_v3 = vpack.c.bf16 %v294_v0, %v293_v63  ;;  %v608_v5 = vpack.c.bf16 %v296_v4, %v295_v2  ;;  %v297_v6 = vld [vmem:[#allocation6 + $0x20] sm:$0xff]  ;;  %v299_v9 = vld [vmem:[#allocation6 + $0x30] sm:$0xff]  ;;  %v300_v10 = vld [vmem:[#allocation6 + $0x38] sm:$0xff] }
  0x44   :  { %588 = vmatpush3.bf16.msra.mxu1 %v587_v32  ;;  %v611_v8 = vpack.c.bf16 %v298_v7, %v297_v6  ;;  %v614_v11 = vpack.c.bf16 %v300_v10, %v299_v9  ;;  %v301_v12 = vld [vmem:[#allocation6 + $0x40] sm:$0xff]  ;;  %v302_v13 = vld [vmem:[#allocation6 + $0x48] sm:$0xff]  ;;  %v304_v16 = vld [vmem:[#allocation6 + $0x58] sm:$0xff] }
  0x45   :  { %567 = vmatpush3.bf16.msra.mxu0 %v566_v15  ;;  %589 = vmatprep.subr.bf16.mxu1 %v716_v1  ;;  %v617_v14 = vpack.c.bf16 %v302_v13, %v301_v12  ;;  %v303_v15 = vld [vmem:[#allocation6 + $0x50] sm:$0xff]  ;;  %v306_v19 = vld [vmem:[#allocation6 + $0x68] sm:$0xff]  ;;  %v397_v21 = vld [vmem:[%s880_s4] ss:$0 sm:$0xff] }
  0x46   :  { %568 = vmatprep.subr.bf16.mxu0 %v716_v1  ;;  %v620_v17 = vpack.c.bf16 %v304_v16, %v303_v15  ;;  %v307_v26 = vld [vmem:[#allocation6 + $0x70] sm:$0xff]  ;;  %v308_v27 = vld [vmem:[#allocation6 + $0x78] sm:$0xff]  ;;  %v398_v29 = vld [vmem:[%s882_s6] ss:$0 sm:$0xff] }
  0x47   :  { %v626_v28 = vpack.c.bf16 %v308_v27, %v307_v26  ;;  %v399_v33 = vld [vmem:[%s884_s8] ss:$0 sm:$0xff] }
  0x48   :  { %591 = vmatpush3.bf16.msra.mxu1 %v590_v38 }
  0x49   :  { %570 = vmatpush3.bf16.msra.mxu0 %v569_v24  ;;  %592 = vmatprep.subr.bf16.mxu1 %v716_v1 }
  0x4a   :  { %571 = vmatprep.subr.bf16.mxu0 %v716_v1 }
  0x4c   :  { %594 = vmatpush3.bf16.msra.mxu1 %v593_v43 }
  0x4d   :  { %573 = vmatpush3.bf16.msra.mxu0 %v572_v30  ;;  %595 = vmatprep.subr.bf16.mxu1 %v716_v1 }
  0x4e   :  { %574 = vmatprep.subr.bf16.mxu0 %v716_v1 }
  0x50   :  { %597 = vmatpush3.bf16.msra.mxu1 %v596_v46 }
  0x51   :  { %576 = vmatpush3.bf16.msra.mxu0 %v575_v36  ;;  %598 = vmatprep.subr.bf16.mxu1 %v716_v1 }
  0x52   :  { %577 = vmatprep.subr.bf16.mxu0 %v716_v1 }
  0x54   :  { %600 = vmatpush3.bf16.msra.mxu1 %v599_v49 }
  0x55   :  { %579 = vmatpush3.bf16.msra.mxu0 %v578_v42  ;;  %601 = vmatprep.subr.bf16.mxu1 %v716_v1 }
  0x56   :  { %604 = vmatprep.subr.bf16.mxu0 %v716_v1 }
  0x58   :  { %603 = vmatpush3.bf16.msra.mxu1 %v602_v62 }
  0xb6   :  { %v78_v51 = vpop.permute.xlu0 %77 }
  0xb7   :  { %v84_v52 = vmul.f32 %v394_v50, %v78_v51 }
  0xb9   :  { %v92_v56 = vadd.f32 %v395_v53, %v84_v52 }
  0xbb   :  { %v96_v55 = vpop.permute.xlu0 %95 }
  0xbc   :  { %v102_v57 = vmul.f32 %v396_v54, %v96_v55 }
  0xbe   :  { %v103_v58 = vadd.f32 %v102_v57, %v92_v56 }
  0xc0   :  { %v104_v59 = vmax.f32 %v103_v58, 0.0 }
  0xc2   :  { %484 = vmatmul.mubr.f32.vlgmr.msra.gmra.mrb[0].mxu0 %v104_v59 }
  0xc3   :  { %553 = vmatprep.mubr.msk.f32.mxu0 %vm718_vm0, %v719_v18  ;;  %606 = vmatpush3.bf16.msra.mxu0 %v605_v3  ;;  %v305_v18 = vld [vmem:[#allocation6 + $0x60] sm:$0xff] }
  0xc4   :  { %607 = vmatprep.subr.bf16.mxu0 %v716_v1  ;;  %v623_v20 = vpack.c.bf16 %v306_v19, %v305_v18 }
  0xc7   :  { %609 = vmatpush3.bf16.msra.mxu0 %v608_v5 }
  0xc8   :  { %610 = vmatprep.subr.bf16.mxu0 %v716_v1 }
  0xcb   :  { %612 = vmatpush3.bf16.msra.mxu0 %v611_v8 }
  0xcc   :  { %613 = vmatprep.subr.bf16.mxu0 %v716_v1 }
  0xcf   :  { %615 = vmatpush3.bf16.msra.mxu0 %v614_v11 }
  0xd0   :  { %616 = vmatprep.subr.bf16.mxu0 %v716_v1 }
  0xd3   :  { %618 = vmatpush3.bf16.msra.mxu0 %v617_v14 }
  0xd4   :  { %619 = vmatprep.subr.bf16.mxu0 %v716_v1 }
  0xd7   :  { %621 = vmatpush3.bf16.msra.mxu0 %v620_v17 }
  0xd8   :  { %622 = vmatprep.subr.bf16.mxu0 %v716_v1 }
  0xdb   :  { %624 = vmatpush3.bf16.msra.mxu0 %v623_v20 }
  0xdc   :  { %625 = vmatprep.subr.bf16.mxu0 %v716_v1 }
  0xdf   :  { %627 = vmatpush3.bf16.msra.mxu0 %v626_v28 }
 0x195   :  { %v194_v22 = vpop.f32.mrb[0].mxu0 }
 0x196   :  { %v195_v23 = vadd.f32 %v397_v21, %v194_v22  ;;  %v485_v24 = vpop.f32.mrb[1].mxu0 }
 0x198   :  { %v198_v25 = vmax.f32 %v195_v23, 0.0 }
 0x19a   :  { %519 = vmatmul.mubr.f32.vlgmr.msra.gmra.mrb[0].mxu1 %v198_v25 }
 0x26d   :  { %v288_v30 = vpop.f32.mrb[0].mxu1 }
 0x26e   :  { %v289_v31 = vadd.f32 %v398_v29, %v288_v30  ;;  %v520_v1 = vpop.f32.mrb[1].mxu1 }
 0x270   :  { %v292_v32 = vmax.f32 %v289_v31, 0.0 }
 0x272   :  { %554 = vmatmul.mubr.f32.vlgmr.msra.gmra.mrb[2].mxu0 %v292_v32 }
 0x345   :  { %v382_v34 = vpop.f32.mrb[2].mxu0 }
 0x346   :  { %v383_v35 = vadd.f32 %v399_v33, %v382_v34  ;;  %v555_v36 = vpop.f32.mrb[3].mxu0 }
 0x348   :  { %387 = vst.msk [vmem:[%s885_s9] sm:$0xff] %vm386_vm1, %v383_v35 }
 0x349   :  { %392 = vsyncpa [#allocation3], 1 }
 0x34a   :  { %393 = vsyncpa [#allocation5], 1 }

</bundles_post_ra>
